<compile_context>
chip_gen: v5e
topology: v5e:2x2
jax: 0.10.0
libtpu: 0.0.40
codegen_flags: <defaults>
</compile_context>

<pallas_src>
import jax
import jax.numpy as jnp
from jax.experimental import pallas as pl
from jax.experimental.pallas import tpu as pltpu


# ----------------------------- Pallas kernel --------------------------------

def _gcn2_fused_kernel(a_ref, x_ref, w1_ref, b1_ref, w2_ref, b2_ref, out_ref):
    # Normalized adjacency: loaded once from VMEM and reused by both layers.
    a = a_ref[...]                                              # [N, N]

    # ---- layer 1: GCNConv(num_features -> hidden) + ReLU -------------------
    agg = jnp.dot(a, x_ref[...], preferred_element_type=jnp.float32)   # [N, Fin]
    h = (jnp.dot(agg, w1_ref[...], preferred_element_type=jnp.float32)
         + b1_ref[...])                                                 # [N, H]
    h = jnp.maximum(h, 0.0)

    # F.dropout(p=0.5, training=False) == identity in eval mode.

    # ---- layer 2: GCNConv(hidden -> num_classes) ---------------------------
    agg = jnp.dot(a, h, preferred_element_type=jnp.float32)             # [N, H]
    out = (jnp.dot(agg, w2_ref[...], preferred_element_type=jnp.float32)
           + b2_ref[...])                                               # [N, C]

    out_ref[...] = out.astype(out_ref.dtype)


def gcn_forward(params, x, a_norm):
    """Fused 2-layer GCN forward: one pallas_call, everything VMEM-resident."""
    n = x.shape[0]
    num_classes = params["w2"].shape[1]
    vmem = lambda: pl.BlockSpec(memory_space=pltpu.MemorySpace.VMEM)
    return pl.pallas_call(
        _gcn2_fused_kernel,
        out_shape=jax.ShapeDtypeStruct((n, num_classes), jnp.float32),
        in_specs=[vmem() for _ in range(6)],
        out_specs=vmem(),
        compiler_params=pltpu.CompilerParams(
            vmem_limit_bytes=32 * 1024 * 1024),
    )(a_norm, x, params["w1"], params["b1"], params["w2"], params["b2"])


# ------------------------------- JAX glue -----------------------------------

def build_normalized_adjacency(edge_index, num_nodes):
    """Densified GCN normalization: D^-1/2 (A + I) D^-1/2, A[dst, src] += 1."""
    src, dst = edge_index[0], edge_index[1]
    a = jnp.zeros((num_nodes, num_nodes), jnp.float32).at[dst, src].add(1.0)
    a_hat = a + jnp.eye(num_nodes, dtype=jnp.float32)
    deg = a_hat.sum(axis=1)
    d_inv_sqrt = jax.lax.rsqrt(jnp.maximum(deg, 1e-12))
    return d_inv_sqrt[:, None] * a_hat * d_inv_sqrt[None, :]


def init_params(key, num_features, hidden_channels, num_classes):
    def glorot(k, shape):
        fan_in, fan_out = shape
        lim = (6.0 / (fan_in + fan_out)) ** 0.5
        return jax.random.uniform(k, shape, jnp.float32, -lim, lim)

    k1, k2 = jax.random.split(key)
    return {
        "w1": glorot(k1, (num_features, hidden_channels)),
        "b1": jnp.zeros((1, hidden_channels), jnp.float32),
        "w2": glorot(k2, (hidden_channels, num_classes)),
        "b2": jnp.zeros((1, num_classes), jnp.float32),
    }


def gcn_reference(params, x, a_norm):
    """Pure-JAX reference for correctness checking."""
    h = a_norm @ x @ params["w1"] + params["b1"]
    h = jnp.maximum(h, 0.0)
    # dropout(p=0.5, training=False) == identity
    return a_norm @ h @ params["w2"] + params["b2"]


# --------------------------------- main --------------------------------------

if __name__ == "__main__":
    NUM_NODES = 16
    NUM_FEATURES = 8
    HIDDEN = 32
    NUM_CLASSES = 4
    NUM_EDGES = 48

    key = jax.random.PRNGKey(0)
    k_x, k_src, k_dst, k_params = jax.random.split(key, 4)

    x = jax.random.normal(k_x, (NUM_NODES, NUM_FEATURES), jnp.float32)
    src = jax.random.randint(k_src, (NUM_EDGES,), 0, NUM_NODES)
    dst = jax.random.randint(k_dst, (NUM_EDGES,), 0, NUM_NODES)
    edge_index = jnp.stack([src, dst], axis=0)                  # [2, E]

    a_norm = build_normalized_adjacency(edge_index, NUM_NODES)  # [N, N]
    params = init_params(k_params, NUM_FEATURES, HIDDEN, NUM_CLASSES)

    out = gcn_forward(params, x, a_norm)
    out = jax.block_until_ready(out)

    ref = gcn_reference(params, x, a_norm)
    assert out.shape == (NUM_NODES, NUM_CLASSES)
    assert jnp.allclose(out, ref, rtol=1e-5, atol=1e-5), "mismatch vs reference"

    print("KERNEL_OK")
</pallas_src>

<mosaic_0001>
module attributes {stable_mosaic.version = 11 : i64} {
  func.func @_gcn2_fused_kernel(%arg0: memref<16x16xf32, #tpu.memory_space<vmem>>, %arg1: memref<16x8xf32, #tpu.memory_space<vmem>>, %arg2: memref<8x32xf32, #tpu.memory_space<vmem>>, %arg3: memref<1x32xf32, #tpu.memory_space<vmem>>, %arg4: memref<32x4xf32, #tpu.memory_space<vmem>>, %arg5: memref<1x4xf32, #tpu.memory_space<vmem>>, %arg6: memref<16x4xf32, #tpu.memory_space<vmem>>) attributes {dimension_semantics = [], scalar_prefetch = 0 : i64, scratch_operands = 0 : i64, tpu.core_type = #tpu.core_type<tc>} {
    %c0 = arith.constant 0 : index
    %c0_0 = arith.constant 0 : index
    %0 = vector.load %arg0[%c0, %c0_0] : memref<16x16xf32, #tpu.memory_space<vmem>>, vector<16x16xf32>
    %c0_1 = arith.constant 0 : index
    %c0_2 = arith.constant 0 : index
    %1 = vector.load %arg1[%c0_1, %c0_2] : memref<16x8xf32, #tpu.memory_space<vmem>>, vector<16x8xf32>
    %cst = arith.constant dense<0.000000e+00> : vector<16x8xf32>
    %2 = tpu.matmul %0, %1, %cst {dimension_numbers = #tpu.dot_dimension_numbers<[1], [0], [0], [1], [0, 0, 1, 1], [], []>} : vector<16x16xf32>, vector<16x8xf32>, vector<16x8xf32> -> vector<16x8xf32>
    %c0_3 = arith.constant 0 : index
    %c0_4 = arith.constant 0 : index
    %3 = vector.load %arg2[%c0_3, %c0_4] : memref<8x32xf32, #tpu.memory_space<vmem>>, vector<8x32xf32>
    %cst_5 = arith.constant dense<0.000000e+00> : vector<16x32xf32>
    %4 = tpu.matmul %2, %3, %cst_5 {dimension_numbers = #tpu.dot_dimension_numbers<[1], [0], [0], [1], [0, 0, 1, 1], [], []>} : vector<16x8xf32>, vector<8x32xf32>, vector<16x32xf32> -> vector<16x32xf32>
    %c0_6 = arith.constant 0 : index
    %c0_7 = arith.constant 0 : index
    %5 = vector.load %arg3[%c0_6, %c0_7] : memref<1x32xf32, #tpu.memory_space<vmem>>, vector<1x32xf32>
    %6 = vector.broadcast %5 : vector<1x32xf32> to vector<16x32xf32>
    %7 = arith.addf %4, %6 : vector<16x32xf32>
    %cst_8 = arith.constant 0.000000e+00 : f32
    %8 = vector.broadcast %cst_8 : f32 to vector<16x32xf32>
    %9 = arith.maximumf %7, %8 : vector<16x32xf32>
    %cst_9 = arith.constant dense<0.000000e+00> : vector<16x32xf32>
    %10 = tpu.matmul %0, %9, %cst_9 {dimension_numbers = #tpu.dot_dimension_numbers<[1], [0], [0], [1], [0, 0, 1, 1], [], []>} : vector<16x16xf32>, vector<16x32xf32>, vector<16x32xf32> -> vector<16x32xf32>
    %c0_10 = arith.constant 0 : index
    %c0_11 = arith.constant 0 : index
    %11 = vector.load %arg4[%c0_10, %c0_11] : memref<32x4xf32, #tpu.memory_space<vmem>>, vector<32x4xf32>
    %cst_12 = arith.constant dense<0.000000e+00> : vector<16x4xf32>
    %12 = tpu.matmul %10, %11, %cst_12 {dimension_numbers = #tpu.dot_dimension_numbers<[1], [0], [0], [1], [0, 0, 1, 1], [], []>} : vector<16x32xf32>, vector<32x4xf32>, vector<16x4xf32> -> vector<16x4xf32>
    %c0_13 = arith.constant 0 : index
    %c0_14 = arith.constant 0 : index
    %13 = vector.load %arg5[%c0_13, %c0_14] : memref<1x4xf32, #tpu.memory_space<vmem>>, vector<1x4xf32>
    %14 = vector.broadcast %13 : vector<1x4xf32> to vector<16x4xf32>
    %15 = arith.addf %12, %14 : vector<16x4xf32>
    %c0_15 = arith.constant 0 : index
    %c0_16 = arith.constant 0 : index
    %16 = vector.load %arg6[%c0_15, %c0_16] : memref<16x4xf32, #tpu.memory_space<vmem>>, vector<16x4xf32>
    tpu.vector_store %arg6[%c0_15, %c0_16], %15 {strides = array<i32>} : memref<16x4xf32, #tpu.memory_space<vmem>>, vector<16x4xf32>,
    return
  }
}

</mosaic_0001>

<bundles_post_ra>
// kernel: tpu_custom_call.1
= control target key start
LH: loop header
LB: loop body
LE: loop exit
PB: predicated region body
PF: predicated region fallthrough
CT: control target
= control target key end

     0   :  { %vm27_vm0 = vcmask 130048   ;;  %vm62_vm1 = vcmask 64512   ;;  %vm125_vm2 = vcmask 261120   ;;  %vm155_vm3 = vcmask 31744   ;;  %s250_s1 = inlined_call_operand.vmem [shape: f32[16,8], index: 1, kind: input, shape index: {}]   ;;  %s251_s0 = inlined_call_operand.vmem [shape: f32[16,16], index: 0, kind: input, shape index: {}]   ;;  %s252_s3 = inlined_call_operand.vmem [shape: f32[1,32], index: 3, kind: input, shape index: {}]   ;;  %s253_s2 = inlined_call_operand.vmem [shape: f32[8,32], index: 2, kind: input, shape index: {}]   ;;  %s254_s4 = inlined_call_operand.vmem [shape: f32[32,4], index: 4, kind: input, shape index: {}]   ;;  %s255_s5 = inlined_call_operand.vmem [shape: f32[1,4], index: 5, kind: input, shape index: {}]   ;;  %s256_s6 = inlined_call_operand.vmem [shape: f32[16,4], index: 6, kind: output, shape index: {}]  }
   0x1   :  { %v26_v0 = vld [vmem:[%s250_s1 + $0x8] sm:$0xff]  ;;  %v25_v1 = vld [vmem:[%s250_s1] sm:$0xff]  ;;  %v120_v7 = vld [vmem:[%s254_s4 + $0x18] sm:$0xff] }
   0x2   :  { %48 = vmatpush.msra.mxu0 %v26_v0  ;;  %v23_v2 = vld [vmem:[%s251_s0] sm:$0xff]  ;;  %v24_v3 = vld [vmem:[%s251_s0 + $0x8] sm:$0xff]  ;;  %v119_v8 = vld [vmem:[%s254_s4 + $0x10] sm:$0xff]  ;;  %144 = vmatpush.msra.mxu3 %v120_v7 }
   0x3   :  { %v57_v4 = vld [vmem:[%s253_s2] sm:$0xff]  ;;  %v118_v9 = vld [vmem:[%s254_s4 + $0x8] sm:$0xff] }
   0x4   :  { %49 = vmatpush.msra.mxu0 %v25_v1  ;;  %84 = vmatpush.msra.mxu1 %v57_v4  ;;  %v170_v11 = vld [vmem:[%s252_s3] ss:$0 sm:$0xff] }
   0x5   :  { %162 = vmatmul.msk.f32.vlgmr.msra.gmra.mxu0 %vm27_vm0, %v23_v2  ;;  %145 = vmatpush.msra.mxu3 %v119_v8  ;;  %v117_v17 = vld [vmem:[%s254_s4] sm:$0xff] }
   0x6   :  { %v171_v20 = vld [vmem:[%s255_s5] ss:$0 sm:$0xff] }
   0x7   :  { %146 = vmatpush.msra.mxu3 %v118_v9 }
   0x9   :  { %147 = vmatpush.msra.mxu3 %v117_v17 }
   0xd   :  { %163 = vmatmul.msk.f32.gmra.mxu0 %vm27_vm0, %v24_v3 }
  0x82   :  { %v51_v5 = vpop.f32.mrf.mxu0 }
  0x83   :  { %164 = vmatmul.msk.f32.vlgmr.msra.gmra.mxu1 %vm62_vm1, %v51_v5 }
  0x8a   :  { %v54_v6 = vpop.f32.mrf.mxu0 }
  0x8b   :  { %165 = vmatmul.msk.f32.gmra.mxu1 %vm62_vm1, %v54_v6 }
 0x100   :  { %v86_v10 = vpop.f32.mrf.mxu1 }
 0x101   :  { %v87_v13 = vadd.f32 %v170_v11, %v86_v10 }
 0x103   :  { %v92_v16 = vmax.f32 %v87_v13, 0.0 }
 0x108   :  { %v89_v12 = vpop.f32.mrf.mxu1 }
 0x109   :  { %v90_v14 = vadd.f32 %v170_v11, %v89_v12 }
 0x10b   :  { %v93_v15 = vmax.f32 %v90_v14, 0.0 }
 0x10d   :  { %108 = vmatpush.msra.mxu2 %v93_v15 }
 0x10f   :  { %109 = vmatpush.msra.mxu2 %v92_v16 }
 0x110   :  { %166 = vmatmul.msk.f32.vlgmr.msra.gmra.mxu2 %vm27_vm0, %v23_v2 }
 0x118   :  { %167 = vmatmul.msk.f32.gmra.mxu2 %vm27_vm0, %v24_v3 }
 0x193   :  { %v111_v18 = vpop.f32.mrf.mxu2 }
 0x194   :  { %168 = vmatmul.msk.f32.vlgmr.msra.gmra.mxu3 %vm125_vm2, %v111_v18 }
 0x19b   :  { %v114_v19 = vpop.f32.mrf.mxu2 }
 0x19c   :  { %169 = vmatmul.msk.f32.gmra.mxu3 %vm125_vm2, %v114_v19 }
 0x217   :  { %v149_v21 = vpop.f32.mrf.mxu3 }
 0x218   :  { %v150_v22 = vadd.f32 %v171_v20, %v149_v21 }
 0x21a   :  { %156 = vst.msk [vmem:[%s256_s6] sm:$0xff] %vm155_vm3, %v150_v22 }
 0x21f   :  { %v152_v23 = vpop.f32.mrf.mxu3 }
 0x220   :  { %v153_v24 = vadd.f32 %v171_v20, %v152_v23 }
 0x222   :  { %157 = vst.msk [vmem:[%s256_s6 + $0x8] sm:$0xff] %vm155_vm3, %v153_v24 }

</bundles_post_ra>
